<compile_context>
chip_gen: v6e
topology: v6e:2x2x1
jax: 0.10.0
libtpu: 0.0.40
codegen_flags: <defaults>
</compile_context>

<pallas_src>
import jax
import jax.numpy as jnp
from jax.experimental import pallas as pl
from jax.experimental.pallas import tpu as pltpu

EPS = 1e-5


def _prenorm_kernel(x_ref, g_ref, b_ref, w_ref, bias_ref, o_ref):
    # x_ref: (C, TS) tile; channels on sublanes, spatial pixels on lanes.
    x = x_ref[...].astype(jnp.float32)

    # LayerNorm over channels, matching the PyTorch module exactly:
    #   std = sqrt(var(unbiased=False));  (x - mean) / (std + eps) * g + b
    mean = jnp.mean(x, axis=0, keepdims=True)            # (1, TS)
    xc = x - mean
    var = jnp.mean(xc * xc, axis=0, keepdims=True)       # (1, TS)
    inv = 1.0 / (jnp.sqrt(var) + EPS)                    # one divide per pixel
    xn = xc * inv * g_ref[...] + b_ref[...]              # (C,TS)*(1,TS)*(C,1)+(C,1)

    # fn: pointwise conv == (C_out, C_in) @ (C_in, TS) on the MXU, + bias.
    y = jnp.dot(w_ref[...], xn, preferred_element_type=jnp.float32) + bias_ref[...]
    o_ref[...] = y.astype(o_ref.dtype)


def prenorm_pallas(x_nchw, g, b, conv_w, conv_b, *, ts_max=2048):
    """x_nchw: (N, C, H, W).  g, b: (C,).  conv_w: (C_out, C_in).  conv_b: (C_out,)."""
    N, C, H, W = x_nchw.shape
    C_out = conv_w.shape[0]
    HW = H * W

    # Free reshape (merges contiguous minor dims): no transpose, no pad copy.
    x3d = x_nchw.reshape(N, C, HW)

    # Spatial (lane) tile: as large as reasonable, multiple of 128 (or full HW).
    if HW <= 128:
        ts = HW
    else:
        ts = min((HW // 128) * 128, ts_max)
    n_s = pl.cdiv(HW, ts)   # partial trailing block is fine (per-pixel independence)

    g2 = g.reshape(C, 1).astype(jnp.float32)
    b2 = b.reshape(C, 1).astype(jnp.float32)
    w32 = conv_w.astype(jnp.float32)                  # (C_out, C_in)
    bias2 = conv_b.reshape(C_out, 1).astype(jnp.float32)

    out3d = pl.pallas_call(
        _prenorm_kernel,
        out_shape=jax.ShapeDtypeStruct((N, C_out, HW), x_nchw.dtype),
        grid_spec=pltpu.PrefetchScalarGridSpec(
            num_scalar_prefetch=0,
            grid=(N, n_s),
            in_specs=[
                pl.BlockSpec((None, C, ts), lambda n, s: (n, 0, s)),   # x tile (batch squeezed)
                pl.BlockSpec((C, 1), lambda n, s: (0, 0)),             # g
                pl.BlockSpec((C, 1), lambda n, s: (0, 0)),             # b
                pl.BlockSpec((C_out, C), lambda n, s: (0, 0)),         # conv weight
                pl.BlockSpec((C_out, 1), lambda n, s: (0, 0)),         # conv bias
            ],
            out_specs=pl.BlockSpec((None, C_out, ts), lambda n, s: (n, 0, s)),
        ),
        compiler_params=pltpu.CompilerParams(
            dimension_semantics=("parallel", "parallel")),
    )(x3d, g2, b2, w32, bias2)

    # Free reshape back to NCHW: no transpose needed in this layout.
    return out3d.reshape(N, C_out, H, W)


def prenorm_reference(x_nchw, g, b, conv_w, conv_b):
    """Pure-JAX reference mirroring the PyTorch forward."""
    x = x_nchw.astype(jnp.float32)
    mean = jnp.mean(x, axis=1, keepdims=True)
    var = jnp.mean((x - mean) ** 2, axis=1, keepdims=True)
    std = jnp.sqrt(var)
    xn = (x - mean) / (std + EPS) * g.reshape(1, -1, 1, 1) + b.reshape(1, -1, 1, 1)
    # 1x1 conv: einsum over channels
    y = jnp.einsum("nchw,oc->nohw", xn, conv_w) + conv_b.reshape(1, -1, 1, 1)
    return y.astype(x_nchw.dtype)


if __name__ == "__main__":
    key = jax.random.PRNGKey(0)
    N, C, H, W = 2, 32, 16, 16   # dim = 32

    k_x, k_w, k_b = jax.random.split(key, 3)
    x = jax.random.normal(k_x, (N, C, H, W), dtype=jnp.float32)

    # LayerNorm params: g = ones(1,dim,1,1), b = zeros(1,dim,1,1)  (as in __init__)
    g = jnp.ones((C,), dtype=jnp.float32)
    b = jnp.zeros((C,), dtype=jnp.float32)

    # fn params (deterministic): 1x1 Conv2d(dim, dim)
    conv_w = 0.1 * jax.random.normal(k_w, (C, C), dtype=jnp.float32)
    conv_b = 0.1 * jax.random.normal(k_b, (C,), dtype=jnp.float32)

    out = prenorm_pallas(x, g, b, conv_w, conv_b)
    out = jax.block_until_ready(out)

    ref = prenorm_reference(x, g, b, conv_w, conv_b)
    assert out.shape == (N, C, H, W)
    assert jnp.allclose(out, ref, atol=1e-4, rtol=1e-4), "mismatch vs reference"

    print("KERNEL_OK")
</pallas_src>

<mosaic_0001>
module attributes {stable_mosaic.version = 11 : i64} {
  func.func @_prenorm_kernel(%arg0: i32, %arg1: i32, %arg2: memref<1x32x256xf32, #tpu.memory_space<vmem>>, %arg3: memref<32x1xf32, #tpu.memory_space<vmem>>, %arg4: memref<32x1xf32, #tpu.memory_space<vmem>>, %arg5: memref<32x32xf32, #tpu.memory_space<vmem>>, %arg6: memref<32x1xf32, #tpu.memory_space<vmem>>, %arg7: memref<1x32x256xf32, #tpu.memory_space<vmem>>) attributes {dimension_semantics = [#tpu.dimension_semantics<parallel>, #tpu.dimension_semantics<parallel>], iteration_bounds = array<i64: 2, 1>, scalar_prefetch = 0 : i64, scratch_operands = 0 : i64, tpu.core_type = #tpu.core_type<tc>, window_params = [{transform_indices = @transform_0, window_bounds = array<i64: 1, 32, 256>}, {pipeline_mode = #tpu.pipeline_mode<synchronous>, transform_indices = @transform_1, window_bounds = array<i64: 32, 1>}, {pipeline_mode = #tpu.pipeline_mode<synchronous>, transform_indices = @transform_2, window_bounds = array<i64: 32, 1>}, {pipeline_mode = #tpu.pipeline_mode<synchronous>, transform_indices = @transform_3, window_bounds = array<i64: 32, 32>}, {pipeline_mode = #tpu.pipeline_mode<synchronous>, transform_indices = @transform_4, window_bounds = array<i64: 32, 1>}, {transform_indices = @transform_5, window_bounds = array<i64: 1, 32, 256>}]} {
    %c0 = arith.constant 0 : index
    %c0_0 = arith.constant 0 : index
    %c0_1 = arith.constant 0 : index
    %0 = vector.load %arg2[%c0, %c0_0, %c0_1] : memref<1x32x256xf32, #tpu.memory_space<vmem>>, vector<1x32x256xf32>
    %1 = vector.shape_cast %0 : vector<1x32x256xf32> to vector<32x256xf32>
    %cst = arith.constant dense<0.000000e+00> : vector<256xf32>
    %2 = vector.multi_reduction <add>, %1, %cst [0] : vector<32x256xf32> to vector<256xf32>
    %3 = vector.shape_cast %2 : vector<256xf32> to vector<1x256xf32>
    %cst_2 = arith.constant 3.200000e+01 : f32
    %4 = vector.broadcast %cst_2 : f32 to vector<1x256xf32>
    %5 = arith.divf %3, %4 : vector<1x256xf32>
    %6 = vector.broadcast %5 : vector<1x256xf32> to vector<32x256xf32>
    %7 = arith.subf %1, %6 : vector<32x256xf32>
    %8 = arith.mulf %7, %7 : vector<32x256xf32>
    %cst_3 = arith.constant dense<0.000000e+00> : vector<256xf32>
    %9 = vector.multi_reduction <add>, %8, %cst_3 [0] : vector<32x256xf32> to vector<256xf32>
    %10 = vector.shape_cast %9 : vector<256xf32> to vector<1x256xf32>
    %cst_4 = arith.constant 3.200000e+01 : f32
    %11 = vector.broadcast %cst_4 : f32 to vector<1x256xf32>
    %12 = arith.divf %10, %11 : vector<1x256xf32>
    %13 = math.sqrt %12 : vector<1x256xf32>
    %cst_5 = arith.constant 9.99999974E-6 : f32
    %14 = vector.broadcast %cst_5 : f32 to vector<1x256xf32>
    %15 = arith.addf %13, %14 : vector<1x256xf32>
    %cst_6 = arith.constant 1.000000e+00 : f32
    %16 = vector.broadcast %cst_6 : f32 to vector<1x256xf32>
    %17 = arith.divf %16, %15 : vector<1x256xf32>
    %18 = vector.broadcast %17 : vector<1x256xf32> to vector<32x256xf32>
    %19 = arith.mulf %7, %18 : vector<32x256xf32>
    %c0_7 = arith.constant 0 : index
    %c0_8 = arith.constant 0 : index
    %20 = vector.load %arg3[%c0_7, %c0_8] : memref<32x1xf32, #tpu.memory_space<vmem>>, vector<32x1xf32>
    %21 = vector.broadcast %20 : vector<32x1xf32> to vector<32x256xf32>
    %22 = arith.mulf %19, %21 : vector<32x256xf32>
    %c0_9 = arith.constant 0 : index
    %c0_10 = arith.constant 0 : index
    %23 = vector.load %arg4[%c0_9, %c0_10] : memref<32x1xf32, #tpu.memory_space<vmem>>, vector<32x1xf32>
    %24 = vector.broadcast %23 : vector<32x1xf32> to vector<32x256xf32>
    %25 = arith.addf %22, %24 : vector<32x256xf32>
    %c0_11 = arith.constant 0 : index
    %c0_12 = arith.constant 0 : index
    %26 = vector.load %arg5[%c0_11, %c0_12] : memref<32x32xf32, #tpu.memory_space<vmem>>, vector<32x32xf32>
    %cst_13 = arith.constant dense<0.000000e+00> : vector<32x256xf32>
    %27 = tpu.matmul %26, %25, %cst_13 {dimension_numbers = #tpu.dot_dimension_numbers<[1], [0], [0], [1], [0, 0, 1, 1], [], []>} : vector<32x32xf32>, vector<32x256xf32>, vector<32x256xf32> -> vector<32x256xf32>
    %c0_14 = arith.constant 0 : index
    %c0_15 = arith.constant 0 : index
    %28 = vector.load %arg6[%c0_14, %c0_15] : memref<32x1xf32, #tpu.memory_space<vmem>>, vector<32x1xf32>
    %29 = vector.broadcast %28 : vector<32x1xf32> to vector<32x256xf32>
    %30 = arith.addf %27, %29 : vector<32x256xf32>
    %c0_16 = arith.constant 0 : index
    %c0_17 = arith.constant 0 : index
    %c0_18 = arith.constant 0 : index
    %31 = vector.load %arg7[%c0_16, %c0_17, %c0_18] : memref<1x32x256xf32, #tpu.memory_space<vmem>>, vector<1x32x256xf32>
    %32 = vector.shape_cast %31 : vector<1x32x256xf32> to vector<32x256xf32>
    %33 = vector.shape_cast %30 : vector<32x256xf32> to vector<1x32x256xf32>
    tpu.vector_store %arg7[%c0_16, %c0_17, %c0_18], %33 {strides = array<i32>} : memref<1x32x256xf32, #tpu.memory_space<vmem>>, vector<1x32x256xf32>,
    return
  }
  func.func @transform_0(%arg0: i32, %arg1: i32) -> (i32, i32, i32) {
    %c0_i32 = arith.constant 0 : i32
    %c0_i32_0 = arith.constant 0 : i32
    return %arg0, %c0_i32, %arg1 : i32, i32, i32
  }
  func.func @transform_1(%arg0: i32, %arg1: i32) -> (i32, i32) {
    %c0_i32 = arith.constant 0 : i32
    %c0_i32_0 = arith.constant 0 : i32
    %c0_i32_1 = arith.constant 0 : i32
    return %c0_i32, %c0_i32_0 : i32, i32
  }
  func.func @transform_2(%arg0: i32, %arg1: i32) -> (i32, i32) {
    %c0_i32 = arith.constant 0 : i32
    %c0_i32_0 = arith.constant 0 : i32
    %c0_i32_1 = arith.constant 0 : i32
    return %c0_i32, %c0_i32_0 : i32, i32
  }
  func.func @transform_3(%arg0: i32, %arg1: i32) -> (i32, i32) {
    %c0_i32 = arith.constant 0 : i32
    %c0_i32_0 = arith.constant 0 : i32
    %c0_i32_1 = arith.constant 0 : i32
    return %c0_i32, %c0_i32_0 : i32, i32
  }
  func.func @transform_4(%arg0: i32, %arg1: i32) -> (i32, i32) {
    %c0_i32 = arith.constant 0 : i32
    %c0_i32_0 = arith.constant 0 : i32
    %c0_i32_1 = arith.constant 0 : i32
    return %c0_i32, %c0_i32_0 : i32, i32
  }
  func.func @transform_5(%arg0: i32, %arg1: i32) -> (i32, i32, i32) {
    %c0_i32 = arith.constant 0 : i32
    %c0_i32_0 = arith.constant 0 : i32
    return %arg0, %c0_i32, %arg1 : i32, i32, i32
  }
}

</mosaic_0001>

<bundles_post_ra>
// kernel: tpu_custom_call.1
= control target key start
LH: loop header
LB: loop body
LE: loop exit
PB: predicated region body
PF: predicated region fallthrough
CT: control target
= control target key end

     0   :  { %10 = vsyncpa [#allocation3], 0  ;;  %s1138_s0 = inlined_call_operand.hbm [shape: f32[2,32,256], index: 0, kind: input, shape index: {}]   ;;  %s1139_s1 = inlined_call_operand.vmem [shape: f32[32,1], index: 1, kind: input, shape index: {}]   ;;  %s1140_s2 = inlined_call_operand.vmem [shape: f32[32,1], index: 2, kind: input, shape index: {}]   ;;  %s1141_s3 = inlined_call_operand.vmem [shape: f32[32,32], index: 3, kind: input, shape index: {}]   ;;  %s1142_s4 = inlined_call_operand.vmem [shape: f32[32,1], index: 4, kind: input, shape index: {}]   ;;  %s1143_s5 = inlined_call_operand.hbm [shape: f32[2,32,256], index: 5, kind: output, shape index: {}]  }
   0x1   :  { %12 = vsyncpa [#allocation3 + $0x1], 0 }
   0x2   :  { %13 = vsyncpa [#allocation4], 0 }
   0x3   :  { %15 = vsyncpa [#allocation4 + $0x1], 0  ;;  %s916_s18 = smov 0   ;;  %s918_s19 = smov 0  }
   0x4   :  { %s920_s20 = smov 0   ;;  %s922_s21 = smov 0  }
   0x5   :  { %s924_s22 = smov 0   ;;  %s926_s23 = smov 0  }
   0x6 LB: > { %s661_s24 = sadd.s32 4294967295, %s876_s23   ;;  %s662_s25 = sadd.s32 4294967294, %s876_s23   ;;  %s876_s23 = sphi %s926_s23, %s21_s23   ;;  %s872_s22 = sphi %s924_s22, %s1154_s22   ;;  %s868_s21 = sphi %s922_s21, %s1153_s21   ;;  %s864_s20 = sphi %s920_s20, %s1152_s20   ;;  %s860_s19 = sphi %s918_s19, %s1151_s19   ;;  %s856_s18 = sphi %s916_s18, %s1150_s18  }
   0x7   : > { %s33_s26 = sadd.s32 1, %s872_s22  ;;  %s42_s27 = sadd.s32 1, %s864_s20 }
   0x8   : > { %p35_p0 = scmp.ge.s32.totalorder %s33_s26, 2  ;;  %p49_p1 = scmp.ne.s32.totalorder %s864_s20, %s860_s19 }
   0x9   : > { %p50_p2 = scmp.eq.s32.totalorder %s876_s23, 0  ;;  %p55_p3 = scmp.ne.s32.totalorder %s860_s19, %s856_s18 }
   0xa   : > { %s1156_s26 = smov (%p35_p0, %s33_s26), 0  ;;  %p56_p5 = scmp.eq.s32.totalorder %s661_s24, 0 }
   0xb   : > { %p957_p4 = por %p50_p2, %p49_p1  ;;  %s37_s29 = ssub.s32 %s872_s22, %s1156_s26 }
   0xc   : > { %p165_p6 = scmp.eq.s32.totalorder %s661_s24, 1  ;;  %p40_p7 = scmp.eq.s32.totalorder %s37_s29, 0 }
   0xd   : > { %p963_p8 = por %p56_p5, %p55_p3  ;;  %p171_p10 = scmp.eq.s32.totalorder %s662_s25, 1 }
   0xe   : > { %p967_p9 = por %p165_p6, %p49_p1  ;;  %p702_p13 = scmp.lt.s32.totalorder %s876_s23, 2 }
   0xf   : > { %s972_s7 = scalar_select %p40_p7, %s864_s20, %s42_s27  }
  0x10   : > { %p974_p11 = por %p171_p10, %p55_p3  ;;  %s203_s9 = sand.u32 1, %s864_s20  }
  0x11   : > { %s665_s10 = sshll.u32 %s203_s9, 6  ;;  %s680_s11 = sshll.u32 %s872_s22, 10 }
  0x12   : > { %s215_s14 = scalar_lea.hbm %s1138_s0, %s680_s11  ;;  %s207_s15 = scalar_lea.vmem [#allocation2], %s665_s10 }
  0x13   : > { %s216_s16 = sshll.u32 %s207_s15, 4  ;;  %p987_p0 = pnand %p702_p13, %p957_p4  ;;  %s217_s16 = int_to_ptr.vmem [resolvable:$true] %s216_s16 }
  0x14   : > { %p668_p1 = scmp.ge.s32.totalorder %s876_s23, 1  ;;  %s204_s24 = scalar_lea.sflag [#allocation3], %s203_s9 }
  0x15   : > { %p770_p2 = pneg %p987_p0  ;;  %s781_s25 = scalar_lea.vmem %s217_s16, 1024 }
  0x16   : > { %p782_p3 = scmp.ne.s32.totalorder %s217_s16, %s781_s25  ;;  %s878_s27 = smov [#allocation2]  }
  0x17   : > { %s786_s29 = sshll.u32 %s878_s27, 4  ;;  %s787_s29 = int_to_ptr.vmem [resolvable:$false] %s786_s29 }
  0x18   : > { %p784_p5 = pnand %p782_p3, %p770_p2  ;;  %s788_s10 = scalar_lea.vmem %s787_s29, 2048 }
  0x19   : > { %p789_p7 = scmp.lt.s32.totalorder %s217_s16, %s787_s29  ;;  %p790_p10 = scmp.lt.s32.totalorder %s788_s10, %s781_s25 }
  0x1a   : > { %p785_p6 = pneg %p784_p5 }
  0x1b   : > { %p791_p12 = por %p790_p10, %p789_p7 }
  0x1d   : > { %p792_p4 = pnand %p791_p12, %p785_p6 }
  0x1f   : > { %795 = shalt.err (!%p792_p4)
}
  0x20   : > { %s879_s28 = smov 256   ;;  %s880_s9 = smov 16  }
  0x21   : > { %697 = dma.hbm_to_vmem [thread:$0]  (!%p987_p0), %s215_s14, 1024, %s217_s16, %s204_s24, %s879_s28, %s879_s28, %s880_s9  }
  0x22   : > { %p224_p13 = scmp.lt.s32.totalorder %s876_s23, 3 }
  0x24   : > { %p225_p2 = pnand %p668_p1, %p224_p13 }
  0x25   : > { %s1000_s11 = sand.u32 (!%p225_p2), 1, %s860_s19  }
  0x26   : > { %228 = sbr.rel (%p225_p2) target bundleno = 403 (0x193), region = 40  ;;  %s669_s12 = sshll.u32 (!%p225_p2), %s1000_s11, 6 }
  0x27   : > { %s231_s13 = scalar_lea.sflag (!%p225_p2), [#allocation3], %s1000_s11  ;;  %s234_s15 = scalar_lea.vmem (!%p225_p2), [#allocation2], %s669_s12 }
  0x2b   : > { %847 = dma.done.wait (%p963_p8), %s231_s13, 1024  }
  0x2c   : > { %849 = vsyncadd (%p963_p8), %s231_s13, 4294966272  ;;  %v881_v0 = vmov 0   ;;  %v391_v1 = vld [vmem:[%s1140_s2 + $0x18] sm:$0xff]  ;;  %v358_v3 = vld [vmem:[%s1139_s1 + $0x10] sm:$0xff]  ;;  %v882_v30 = vmov 0.0   ;;  %vm448_vm4 = vcmask 261120  }
  0x2d   : > { %759 = vset.pattern.permute.xlu1 %v881_v0  ;;  %758 = vset.pattern.permute.xlu0 %v881_v0  ;;  %v359_v2 = vld [vmem:[%s1139_s1 + $0x18] sm:$0xff]  ;;  %v357_v4 = vld [vmem:[%s1139_s1 + $0x8] sm:$0xff]  ;;  %v263_v5 = vld [vmem:[%s234_s15] sm:$0xff]  ;;  %s260_s29 = scalar_lea.vmem [#allocation5], %s669_s12  ;;  %s681_s10 = sshll.u32 %s868_s21, 10 }
  0x2e   : > { %409 = vperm.xlu1 %759, %v391_v1   ;;  %377 = vperm.xlu0 %758, %v359_v2   ;;  %v264_v6 = vld [vmem:[%s234_s15 + $0x8] sm:$0xff]  ;;  %v265_v7 = vld [vmem:[%s234_s15 + $0x10] sm:$0xff]  ;;  %v266_v8 = vld [vmem:[%s234_s15 + $0x18] sm:$0xff]  ;;  %s574_s30 = sshll.u32 %s260_s29, 4  ;;  %s1090_s9 = scalar_lea.hbm %s1143_s5, %s681_s10  ;;  %s1085_s30 = int_to_ptr.vmem [resolvable:$true] %s574_s30 }
  0x2f   : > { %v267_v9 = vld [vmem:[%s234_s15 + $0x20] sm:$0xff]  ;;  %v268_v10 = vld [vmem:[%s234_s15 + $0x28] sm:$0xff]  ;;  %v271_v11 = vadd.f32 %v265_v7, %v263_v5  ;;  %v390_v12 = vld [vmem:[%s1140_s2 + $0x10] sm:$0xff]  ;;  %v280_v15 = vadd.f32 %v266_v8, %v264_v6  ;;  %525 = vmatprep.mubr.f32.mxu0 %v882_v30  ;;  %537 = vmatprep.mubr.f32.mxu1 %v882_v30  ;;  %s559_s21 = scalar_lea.sflag [#allocation4], %s1000_s11  ;;  %s796_s13 = scalar_lea.vmem %s1085_s30, 1024 }
  0x30   : > { %v356_v13 = vld [vmem:[%s1139_s1] sm:$0xff]  ;;  %v269_v14 = vld [vmem:[%s234_s15 + $0x30] sm:$0xff]  ;;  %v270_v16 = vld [vmem:[%s234_s15 + $0x38] sm:$0xff]  ;;  %p797_p8 = scmp.ne.s32.totalorder %s1085_s30, %s796_s13  ;;  %s883_s14 = smov [#allocation5]  }
  0x31   : > { %v272_v17 = vadd.f32 %v271_v11, %v267_v9  ;;  %v281_v18 = vadd.f32 %v280_v15, %v268_v10  ;;  %v389_v20 = vld [vmem:[%s1140_s2 + $0x8] sm:$0xff]  ;;  %v388_v21 = vld [vmem:[%s1140_s2] sm:$0xff]  ;;  %v426_v33 = vld [vmem:[%s1142_s4 + $0x10] sm:$0xff]  ;;  %s800_s16 = sshll.u32 %s883_s14, 4  ;;  %s801_s16 = int_to_ptr.vmem [resolvable:$false] %s800_s16 }
  0x32   : > { %372 = vperm.xlu0 %758, %v358_v3   ;;  %367 = vperm.xlu1 %759, %v357_v4   ;;  %v424_v26 = vld [vmem:[%s1142_s4] sm:$0xff]  ;;  %v425_v27 = vld [vmem:[%s1142_s4 + $0x8] sm:$0xff]  ;;  %v427_v34 = vld [vmem:[%s1142_s4 + $0x18] sm:$0xff]  ;;  %p798_p12 = pnand %p797_p8, %p967_p9  ;;  %s802_s17 = scalar_lea.vmem %s801_s16, 2048 }
  0x33   : > { %v273_v19 = vadd.f32 %v272_v17, %v269_v14  ;;  %v282_v22 = vadd.f32 %v281_v18, %v270_v16  ;;  %p803_p1 = scmp.lt.s32.totalorder %s1085_s30, %s801_s16  ;;  %p804_p3 = scmp.lt.s32.totalorder %s802_s17, %s796_s13 }
  0x34   : > { %p799_p0 = pneg %p798_p12 }
  0x35   : > { %v274_v23 = vrot.slane %v273_v19, 4  ;;  %v283_v24 = vrot.slane %v282_v22, 4  ;;  %p805_p5 = por %p804_p3, %p803_p1 }
  0x36   : > { %404 = vperm.xlu0 %758, %v390_v12   ;;  %362 = vperm.xlu1 %759, %v356_v13  }
  0x37   : > { %v275_v25 = vadd.f32 %v274_v23, %v273_v19  ;;  %v284_v28 = vadd.f32 %v283_v24, %v282_v22  ;;  %p806_p6 = pnand %p805_p5, %p799_p0 }
  0x39   : > { %v276_v29 = vrot.slane %v275_v25, 2  ;;  %v285_v31 = vrot.slane %v284_v28, 2 }
  0x3a   : > { %399 = vperm.xlu0 %758, %v389_v20   ;;  %394 = vperm.xlu1 %759, %v388_v21  }
  0x3b   : > { %v277_v32 = vadd.f32 %v276_v29, %v275_v25  ;;  %v286_v35 = vadd.f32 %v285_v31, %v284_v28 }
  0x3d   : > { %v278_v36 = vrot.slane %v277_v32, 1  ;;  %v287_v37 = vrot.slane %v286_v35, 1 }
  0x3e   : > { %430 = vperm.xlu0 %758, %v424_v26   ;;  %435 = vperm.xlu1 %759, %v425_v27  }
  0x3f   : > { %v279_v38 = vadd.f32 %v278_v36, %v277_v32  ;;  %v288_v39 = vadd.f32 %v287_v37, %v286_v35 }
  0x41   : > { %v290_v40 = vmul.f32 0.03125, %v279_v38  ;;  %v291_v41 = vmul.f32 0.03125, %v288_v39 }
  0x42   : > { %440 = vperm.xlu0 %758, %v426_v33   ;;  %445 = vperm.xlu1 %759, %v427_v34  }
  0x43   : > { %v1048_v42 = vsub.f32 %v263_v5, %v290_v40  ;;  %v1050_v43 = vsub.f32 %v265_v7, %v290_v40  ;;  %v1052_v44 = vsub.f32 %v264_v6, %v291_v41  ;;  %v1054_v45 = vsub.f32 %v266_v8, %v291_v41 }
  0x44   : > { %v296_v46 = vsub.f32 %v267_v9, %v290_v40  ;;  %v297_v49 = vsub.f32 %v268_v10, %v291_v41  ;;  %v298_v52 = vsub.f32 %v269_v14, %v290_v40  ;;  %v299_v55 = vsub.f32 %v270_v16, %v291_v41 }
  0x45   : > { %v300_v47 = vmul.f32 %v1048_v42, %v1048_v42  ;;  %v302_v48 = vmul.f32 %v1050_v43, %v1050_v43  ;;  %v301_v50 = vmul.f32 %v1052_v44, %v1052_v44  ;;  %v303_v51 = vmul.f32 %v1054_v45, %v1054_v45 }
  0x46   : > { %v304_v53 = vmul.f32 %v296_v46, %v296_v46  ;;  %v305_v56 = vmul.f32 %v297_v49, %v297_v49  ;;  %v306_v58 = vmul.f32 %v298_v52, %v298_v52  ;;  %v307_v60 = vmul.f32 %v299_v55, %v299_v55 }
  0x47   : > { %v308_v54 = vadd.f32 %v302_v48, %v300_v47  ;;  %v317_v57 = vadd.f32 %v303_v51, %v301_v50 }
  0x49   : > { %v309_v59 = vadd.f32 %v308_v54, %v304_v53  ;;  %v318_v61 = vadd.f32 %v317_v57, %v305_v56 }
  0x4b   : > { %v310_v62 = vadd.f32 %v309_v59, %v306_v58  ;;  %v319_v63 = vadd.f32 %v318_v61, %v307_v60 }
  0x4d   : > { %v311_v0 = vrot.slane %v310_v62, 4  ;;  %v320_v1 = vrot.slane %v319_v63, 4 }
  0x4f   : > { %v312_v2 = vadd.f32 %v311_v0, %v310_v62  ;;  %v321_v3 = vadd.f32 %v320_v1, %v319_v63  ;;  %v421_v63 = vld [vmem:[%s1141_s3 + $0x8] sm:$0xff]  ;;  %v423_v0 = vld [vmem:[%s1141_s3 + $0x18] sm:$0xff] }
  0x51   : > { %v313_v4 = vrot.slane %v312_v2, 2  ;;  %v322_v5 = vrot.slane %v321_v3, 2 }
  0x53   : > { %v314_v6 = vadd.f32 %v313_v4, %v312_v2  ;;  %v323_v7 = vadd.f32 %v322_v5, %v321_v3 }
  0x55   : > { %v315_v8 = vrot.slane %v314_v6, 1  ;;  %v324_v9 = vrot.slane %v323_v7, 1 }
  0x57   : > { %v316_v10 = vadd.f32 %v315_v8, %v314_v6  ;;  %v325_v11 = vadd.f32 %v324_v9, %v323_v7 }
  0x59   : > { %v326_v12 = vmul.f32 0.03125, %v316_v10  ;;  %v327_v13 = vmul.f32 0.03125, %v325_v11 }
  0x5b   : > { %760 = vrsqrt.f32 %v326_v12  ;;  %vm330_vm0 = vcmp.eq.f32.partialorder %v326_v12, inf  ;;  %vm337_vm1 = vcmp.eq.f32.partialorder %v327_v13, inf  ;;  %v333_v18 = vand.u32 2147483648, %v326_v12 }
  0x5c   : > { %762 = vrsqrt.f32 %v327_v13  ;;  %vm332_vm2 = vcmp.eq.f32.partialorder %v326_v12, 0.0  ;;  %v340_v20 = vand.u32 2147483648, %v327_v13  ;;  %vm339_vm3 = vcmp.eq.f32.partialorder %v327_v13, 0.0 }
  0x68   : > { %v761_v14 = vpop.eup %760 }
  0x69   : > { %v763_v15 = vpop.eup %762  ;;  %v329_v16 = vmul.f32 %v761_v14, %v326_v12 }
  0x6a   : > { %v336_v17 = vmul.f32 %v763_v15, %v327_v13 }
  0x6b   : > { %v331_v19 = vsel %vm330_vm0, %v326_v12, %v329_v16 }
  0x6c   : > { %v338_v21 = vsel %vm337_vm1, %v327_v13, %v336_v17  ;;  %v334_v22 = vsel %vm332_vm2, %v333_v18, %v331_v19 }
  0x6d   : > { %v341_v23 = vsel %vm339_vm3, %v340_v20, %v338_v21  ;;  %v342_v24 = vadd.f32 1e-05, %v334_v22 }
  0x6e   : > { %v343_v25 = vadd.f32 1e-05, %v341_v23 }
  0x6f   : > { %764 = vrcp.f32 %v342_v24 }
  0x70   : > { %766 = vrcp.f32 %v343_v25 }
  0x7c   : > { %v765_v26 = vpop.eup %764 }
  0x7d   : > { %v767_v27 = vpop.eup %766  ;;  %v354_v28 = vmul.f32 %v765_v26, %v298_v52  ;;  %v352_v35 = vmul.f32 %v765_v26, %v296_v46  ;;  %v350_v48 = vmul.f32 %v765_v26, %v1050_v43 }
  0x7e   : > { %v355_v29 = vmul.f32 %v767_v27, %v299_v55  ;;  %v353_v36 = vmul.f32 %v767_v27, %v297_v49  ;;  %v351_v50 = vmul.f32 %v767_v27, %v1054_v45  ;;  %v349_v46 = vmul.f32 %v767_v27, %v1052_v44  ;;  %v422_v44 = vld [vmem:[%s1141_s3 + $0x10] sm:$0xff] }
  0x7f   : > { %v348_v49 = vmul.f32 %v765_v26, %v1048_v42  ;;  %v420_v42 = vld [vmem:[%s1141_s3] sm:$0xff] }
  0xa9   : > { %v410_v31 = vpop.permute.xlu1 %409  ;;  %v378_v32 = vpop.permute.xlu0 %377 }
  0xaa   : > { %v386_v33 = vmul.f32 %v378_v32, %v354_v28  ;;  %v387_v34 = vmul.f32 %v378_v32, %v355_v29 }
  0xac   : > { %v419_v37 = vadd.f32 %v410_v31, %v387_v34  ;;  %v418_v38 = vadd.f32 %v410_v31, %v386_v33 }
  0xad   : > { %v373_v39 = vpop.permute.xlu0 %372  ;;  %v368_v40 = vpop.permute.xlu1 %367 }
  0xae   : > { %485 = vmatprep.subr.mxu0 %v419_v37  ;;  %682 = vmatprep.subr.mxu1 %v419_v37  ;;  %v384_v41 = vmul.f32 %v373_v39, %v352_v35  ;;  %v385_v47 = vmul.f32 %v373_v39, %v353_v36  ;;  %v382_v55 = vmul.f32 %v368_v40, %v350_v48 }
  0xaf   : > { %486 = vmatpush1.msra.mxu0 %v418_v38  ;;  %686 = vmatpush1.msra.mxu1 %v418_v38  ;;  %v383_v56 = vmul.f32 %v368_v40, %v351_v50 }
  0xb1   : > { %v405_v51 = vpop.permute.xlu0 %404  ;;  %v363_v52 = vpop.permute.xlu1 %362 }
  0xb2   : > { %v416_v53 = vadd.f32 %v405_v51, %v384_v41  ;;  %v417_v54 = vadd.f32 %v405_v51, %v385_v47  ;;  %v381_v43 = vmul.f32 %v363_v52, %v349_v46  ;;  %v380_v60 = vmul.f32 %v363_v52, %v348_v49 }
  0xb4   : > { %487 = vmatprep.subr.mxu0 %v417_v54  ;;  %683 = vmatprep.subr.mxu1 %v417_v54 }
  0xb5   : > { %v400_v57 = vpop.permute.xlu0 %399  ;;  %v395_v58 = vpop.permute.xlu1 %394  ;;  %488 = vmatpush1.msra.mxu0 %v416_v53  ;;  %687 = vmatpush1.msra.mxu1 %v416_v53 }
  0xb6   : > { %v414_v59 = vadd.f32 %v400_v57, %v382_v55  ;;  %v415_v45 = vadd.f32 %v400_v57, %v383_v56  ;;  %v413_v61 = vadd.f32 %v395_v58, %v381_v43  ;;  %v412_v62 = vadd.f32 %v395_v58, %v380_v60 }
  0xb8   : > { %489 = vmatprep.subr.mxu0 %v415_v45  ;;  %684 = vmatprep.subr.mxu1 %v415_v45 }
  0xb9   : > { %490 = vmatpush1.msra.mxu0 %v414_v59  ;;  %688 = vmatpush1.msra.mxu1 %v414_v59  ;;  %v431_v1 = vpop.permute.xlu0 %430  ;;  %v436_v2 = vpop.permute.xlu1 %435 }
  0xba   : > { %491 = vmatprep.subr.mxu0 %v413_v61  ;;  %685 = vmatprep.subr.mxu1 %v413_v61 }
  0xbb   : > { %492 = vmatpush1.msra.mxu0 %v412_v62  ;;  %689 = vmatpush1.msra.mxu1 %v412_v62 }
  0xbc   : > { %671 = vmatmul.mubr.msk.f32.vlgmr.msra.gmra.mxu0 %vm448_vm4, %v420_v42  ;;  %673 = vmatmul.mubr.msk.f32.vlgmr.msra.gmra.mxu1 %vm448_vm4, %v422_v44 }
  0xbd   : > { %531 = vmatprep.mubr.f32.mxu0 %v882_v30  ;;  %543 = vmatprep.mubr.f32.mxu1 %v882_v30  ;;  %v441_v3 = vpop.permute.xlu0 %440  ;;  %v446_v9 = vpop.permute.xlu1 %445 }
  0xc0   : > { %672 = vmatmul.mubr.msk.f32.gmra.mxu0 %vm448_vm4, %v421_v63  ;;  %674 = vmatmul.mubr.msk.f32.gmra.mxu1 %vm448_vm4, %v423_v0 }
 0x17c   : > { %v527_v4 = vpop.f32.mrf.mxu0  ;;  %v539_v5 = vpop.f32.mrf.mxu1 }
 0x17d   : > { %v528_v6 = vadd.f32 %v527_v4, %v431_v1  ;;  %v540_v7 = vadd.f32 %v539_v5, %v441_v3 }
 0x17e   : > { %v529_v30 = vpop.f32.mrf.mxu0  ;;  %v541_v8 = vpop.f32.mrf.mxu1 }
 0x17f   : > { %550 = vst [vmem:[%s260_s29] sm:$0xff] %v528_v6  ;;  %554 = vst [vmem:[%s260_s29 + $0x20] sm:$0xff] %v540_v7  ;;  %v530_v10 = vadd.f32 %v529_v30, %v431_v1  ;;  %v542_v11 = vadd.f32 %v541_v8, %v441_v3 }
 0x180   : > { %v533_v12 = vpop.f32.mrf.mxu0  ;;  %v545_v13 = vpop.f32.mrf.mxu1 }
 0x181   : > { %551 = vst [vmem:[%s260_s29 + $0x8] sm:$0xff] %v530_v10  ;;  %555 = vst [vmem:[%s260_s29 + $0x28] sm:$0xff] %v542_v11  ;;  %v534_v14 = vadd.f32 %v533_v12, %v436_v2  ;;  %v546_v15 = vadd.f32 %v545_v13, %v446_v9 }
 0x182   : > { %v535_v16 = vpop.f32.mrf.mxu0  ;;  %v547_v17 = vpop.f32.mrf.mxu1 }
 0x183   : > { %552 = vst [vmem:[%s260_s29 + $0x10] sm:$0xff] %v534_v14  ;;  %556 = vst [vmem:[%s260_s29 + $0x30] sm:$0xff] %v546_v15  ;;  %v536_v18 = vadd.f32 %v535_v16, %v436_v2  ;;  %v548_v19 = vadd.f32 %v547_v17, %v446_v9 }
 0x185   : > { %553 = vst [vmem:[%s260_s29 + $0x18] sm:$0xff] %v536_v18  ;;  %557 = vst [vmem:[%s260_s29 + $0x38] sm:$0xff] %v548_v19 }
 0x186   : > { %809 = shalt.err (!%p806_p6)
}
 0x187   : > { %s810_s24 = scalar_lea.hbm %s1090_s9, 1024  ;;  %s814_s27 = scalar_lea.hbm %s1143_s5, 2048 }
 0x188   : > { %p811_p7 = scmp.ne.s32.totalorder %s1090_s9, %s810_s24  ;;  %p815_p13 = scmp.lt.s32.totalorder %s1090_s9, %s1143_s5 }
 0x189   : > { %p816_p2 = scmp.lt.s32.totalorder %s814_s27, %s810_s24 }
 0x18a   : > { %p812_p10 = pnand %p811_p7, %p967_p9 }
 0x18b   : > { %p817_p8 = por %p816_p2, %p815_p13 }
 0x18c   : > { %p813_p4 = pneg %p812_p10 }
 0x18e   : > { %p818_p12 = pnand %p817_p8, %p813_p4 }
 0x190   : > { %821 = shalt.err (!%p818_p12)
}
 0x191   : > { %s884_s12 = smov 256   ;;  %s885_s28 = smov 16  }
 0x192   : > { %692 = dma.vmem_to_hbm [thread:$0]  (%p967_p9), %s1085_s30, 1024, %s1090_s9, %s559_s21, %s884_s12, %s884_s12, %s885_s28  }
 0x193 PF: > { %s589_s13 = sand.u32 1, %s856_s18   ;;  %p1149_p0 = scmp.ge.s32.totalorder %s876_s23, 2 }
 0x194   : > { %s590_s14 = scalar_lea.sflag [#allocation4], %s589_s13 }
 0x195   : > { %p699_p1 = pnand %p1149_p0, %p974_p11 }
 0x197   : > { %p700_p3 = pneg %p699_p1 }
 0x199   : > { %851 = dma.done.wait (%p700_p3), %s590_s14, 1024  }
 0x19a   : > { %853 = vsyncadd (%p700_p3), %s590_s14, 4294966272  ;;  %s21_s23 = sadd.s32 1, %s876_s23   ;;  %s1150_s18 = smov %s860_s19 }
 0x19b   : > { %p18_p5 = scmp.ge.s32.totalorder %s21_s23, 4   ;;  %s1151_s19 = smov %s864_s20 }
 0x19c   : > { %s1152_s20 = smov %s972_s7  ;;  %s1153_s21 = smov %s872_s22 }
 0x19d   : > { %s1154_s22 = smov %s1156_s26  ;;  %20 = sbr.rel (!%p18_p5) target bundleno = 6 (0x6), region = 85 }
 0x1a2   :  { %595 = vsyncpa [#allocation3], 1 }
 0x1a3   :  { %597 = vsyncpa [#allocation3 + $0x1], 1 }
 0x1a4   :  { %598 = vsyncpa [#allocation4], 1 }
 0x1a5   :  { %600 = vsyncpa [#allocation4 + $0x1], 1 }

</bundles_post_ra>
